<compile_context>
chip_gen: v5e
topology: v5e:2x2
jax: 0.10.0
libtpu: 0.0.40
codegen_flags: <defaults>
</compile_context>

<pallas_src>
import functools

import jax
import jax.numpy as jnp
from jax.experimental import pallas as pl
from jax.experimental.pallas import tpu as pltpu


def mlp_kernel(x_ref, w1_ref, b1_ref, w2_ref, b2_ref, o_ref):
    # Layer 1: Linear(784 -> 128p) + exact sigmoid.  f32 throughout: the kernel
    # is HBM-bandwidth bound on x, so MXU/EUP precision costs are free filler.
    z1 = jnp.dot(x_ref[...], w1_ref[...],
                 preferred_element_type=jnp.float32) + b1_ref[...]
    h = 1.0 / (1.0 + jnp.exp(-z1))
    # Layer 2: Linear(128p -> 128p).  Rows 64..127 of w2_p are zero, so the
    # sigmoid(0)=0.5 values sitting in padded hidden lanes contribute nothing.
    z2 = jnp.dot(h, w2_ref[...],
                 preferred_element_type=jnp.float32) + b2_ref[...]
    o_ref[...] = z2.astype(o_ref.dtype)


def _round_up(n, m):
    return ((n + m - 1) // m) * m


def mlp_forward(x, w1, b1, w2, b2, *, tb=512):
    """x: [B, 784] f32; w1: [784, 64]; b1: [1, 64]; w2: [64, 10]; b2: [1, 10]."""
    B, K = x.shape
    H = w1.shape[1]
    O = w2.shape[1]

    H_p = _round_up(H, 128)   # 64  -> 128 (clean MXU / lane-dense hidden)
    O_p = _round_up(O, 128)   # 10  -> 128 (lane-dense unmasked stores)

    # Clamp the batch tile for small batches; keep it a multiple of 8 sublanes.
    tb = min(tb, _round_up(B, 8))

    # Tiny, one-off weight/bias padding (VMEM-resident inside the kernel).
    w1_p = jnp.pad(w1, ((0, 0), (0, H_p - H))).astype(jnp.float32)
    b1_p = jnp.pad(b1, ((0, 0), (0, H_p - H))).astype(jnp.float32)
    w2_p = jnp.pad(w2, ((0, H_p - H), (0, O_p - O))).astype(jnp.float32)
    b2_p = jnp.pad(b2, ((0, 0), (0, O_p - O))).astype(jnp.float32)

    grid = (pl.cdiv(B, tb),)

    cost = pl.CostEstimate(
        flops=2 * B * K * H_p + 2 * B * H_p * O_p,
        transcendentals=B * H_p,
        bytes_accessed=(x.size * 4 + w1_p.size * 4 + w2_p.size * 4
                        + b1_p.size * 4 + b2_p.size * 4 + B * O_p * 4),
    )

    out_p = pl.pallas_call(
        mlp_kernel,
        out_shape=jax.ShapeDtypeStruct((B, O_p), jnp.float32),
        grid_spec=pltpu.PrefetchScalarGridSpec(
            num_scalar_prefetch=0,
            grid=grid,
            in_specs=[
                # Activations: unpadded f32, tiled along batch, double-buffered.
                # Last block dim (784) equals the full array dim -> legal tile.
                pl.BlockSpec((tb, K), lambda i: (i, 0)),
                # Weights / biases: constant index maps -> loaded once, resident.
                pl.BlockSpec((K, H_p), lambda i: (0, 0)),
                pl.BlockSpec((1, H_p), lambda i: (0, 0)),
                pl.BlockSpec((H_p, O_p), lambda i: (0, 0)),
                pl.BlockSpec((1, O_p), lambda i: (0, 0)),
            ],
            out_specs=pl.BlockSpec((tb, O_p), lambda i: (i, 0)),
        ),
        compiler_params=pltpu.CompilerParams(
            dimension_semantics=("parallel",),   # batch axis: megacore-shardable
        ),
        cost_estimate=cost,
    )(x, w1_p, b1_p, w2_p, b2_p)

    # Trim the lane padding (10 real logits out of 128 padded lanes).
    return out_p[:, :O]


def init_params(key):
    # Mirror PyTorch nn.Linear default init: U(-1/sqrt(fan_in), 1/sqrt(fan_in)).
    k1, k2, k3, k4 = jax.random.split(key, 4)
    in1, out1 = 28 * 28, 64
    in2, out2 = 64, 10
    lim1 = 1.0 / jnp.sqrt(jnp.float32(in1))
    lim2 = 1.0 / jnp.sqrt(jnp.float32(in2))
    # PyTorch stores (out, in); transpose to (in, out) so the kernel does x @ W.
    w1_pt = jax.random.uniform(k1, (out1, in1), jnp.float32, -lim1, lim1)
    b1 = jax.random.uniform(k2, (1, out1), jnp.float32, -lim1, lim1)
    w2_pt = jax.random.uniform(k3, (out2, in2), jnp.float32, -lim2, lim2)
    b2 = jax.random.uniform(k4, (1, out2), jnp.float32, -lim2, lim2)
    return w1_pt.T, b1, w2_pt.T, b2


def reference_forward(x, w1, b1, w2, b2):
    # Pure-f32 reference matching the PyTorch module's math.
    h = jax.nn.sigmoid(x @ w1 + b1)
    return h @ w2 + b2


if __name__ == "__main__":
    key = jax.random.PRNGKey(0)
    kx, kp = jax.random.split(key)

    w1, b1, w2, b2 = init_params(kp)
    fwd = jax.jit(functools.partial(mlp_forward, tb=512))

    # Small-batch check (tile clamps to 8 rows, single grid step, no padding).
    B = 8
    x = jax.random.normal(kx, (B, 28 * 28), jnp.float32)
    out = jax.block_until_ready(fwd(x, w1, b1, w2, b2))
    ref = reference_forward(x, w1, b1, w2, b2)
    assert out.shape == (B, 10)
    assert jnp.allclose(out, ref, atol=2e-2, rtol=2e-2)

    # Multi-tile ragged check (grid > 1, last block's stores are masked).
    fwd_small_tile = jax.jit(functools.partial(mlp_forward, tb=128))
    B2 = 300
    x2 = jax.random.normal(jax.random.PRNGKey(1), (B2, 28 * 28), jnp.float32)
    out2 = jax.block_until_ready(fwd_small_tile(x2, w1, b1, w2, b2))
    ref2 = reference_forward(x2, w1, b1, w2, b2)
    assert out2.shape == (B2, 10)
    assert jnp.allclose(out2, ref2, atol=2e-2, rtol=2e-2)

    print("KERNEL_OK")
</pallas_src>

<mosaic_0001>
module attributes {stable_mosaic.version = 11 : i64} {
  func.func @mlp_kernel(%arg0: i32, %arg1: memref<8x784xf32, #tpu.memory_space<vmem>>, %arg2: memref<784x128xf32, #tpu.memory_space<vmem>>, %arg3: memref<1x128xf32, #tpu.memory_space<vmem>>, %arg4: memref<128x128xf32, #tpu.memory_space<vmem>>, %arg5: memref<1x128xf32, #tpu.memory_space<vmem>>, %arg6: memref<8x128xf32, #tpu.memory_space<vmem>>) attributes {dimension_semantics = [#tpu.dimension_semantics<parallel>], iteration_bounds = array<i64: 1>, scalar_prefetch = 0 : i64, scratch_operands = 0 : i64, tpu.core_type = #tpu.core_type<tc>, window_params = [{transform_indices = @transform_0, window_bounds = array<i64: 8, 784>}, {pipeline_mode = #tpu.pipeline_mode<synchronous>, transform_indices = @transform_1, window_bounds = array<i64: 784, 128>}, {pipeline_mode = #tpu.pipeline_mode<synchronous>, transform_indices = @transform_2, window_bounds = array<i64: 1, 128>}, {pipeline_mode = #tpu.pipeline_mode<synchronous>, transform_indices = @transform_3, window_bounds = array<i64: 128, 128>}, {pipeline_mode = #tpu.pipeline_mode<synchronous>, transform_indices = @transform_4, window_bounds = array<i64: 1, 128>}, {transform_indices = @transform_5, window_bounds = array<i64: 8, 128>}]} {
    %c0 = arith.constant 0 : index
    %c0_0 = arith.constant 0 : index
    %0 = vector.load %arg1[%c0, %c0_0] : memref<8x784xf32, #tpu.memory_space<vmem>>, vector<8x784xf32>
    %c0_1 = arith.constant 0 : index
    %c0_2 = arith.constant 0 : index
    %1 = vector.load %arg2[%c0_1, %c0_2] : memref<784x128xf32, #tpu.memory_space<vmem>>, vector<784x128xf32>
    %cst = arith.constant dense<0.000000e+00> : vector<8x128xf32>
    %2 = tpu.matmul %0, %1, %cst {dimension_numbers = #tpu.dot_dimension_numbers<[1], [0], [0], [1], [0, 0, 1, 1], [], []>} : vector<8x784xf32>, vector<784x128xf32>, vector<8x128xf32> -> vector<8x128xf32>
    %c0_3 = arith.constant 0 : index
    %c0_4 = arith.constant 0 : index
    %3 = vector.load %arg3[%c0_3, %c0_4] : memref<1x128xf32, #tpu.memory_space<vmem>>, vector<1x128xf32>
    %4 = vector.broadcast %3 : vector<1x128xf32> to vector<8x128xf32>
    %5 = arith.addf %2, %4 : vector<8x128xf32>
    %cst_5 = arith.constant 0.000000e+00 : f32
    %6 = vector.broadcast %cst_5 : f32 to vector<8x128xf32>
    %7 = arith.subf %6, %5 : vector<8x128xf32>
    %8 = math.exp %7 : vector<8x128xf32>
    %cst_6 = arith.constant 1.000000e+00 : f32
    %9 = vector.broadcast %cst_6 : f32 to vector<8x128xf32>
    %10 = arith.addf %9, %8 : vector<8x128xf32>
    %cst_7 = arith.constant 1.000000e+00 : f32
    %11 = vector.broadcast %cst_7 : f32 to vector<8x128xf32>
    %12 = arith.divf %11, %10 : vector<8x128xf32>
    %c0_8 = arith.constant 0 : index
    %c0_9 = arith.constant 0 : index
    %13 = vector.load %arg4[%c0_8, %c0_9] : memref<128x128xf32, #tpu.memory_space<vmem>>, vector<128x128xf32>
    %cst_10 = arith.constant dense<0.000000e+00> : vector<8x128xf32>
    %14 = tpu.matmul %12, %13, %cst_10 {dimension_numbers = #tpu.dot_dimension_numbers<[1], [0], [0], [1], [0, 0, 1, 1], [], []>} : vector<8x128xf32>, vector<128x128xf32>, vector<8x128xf32> -> vector<8x128xf32>
    %c0_11 = arith.constant 0 : index
    %c0_12 = arith.constant 0 : index
    %15 = vector.load %arg5[%c0_11, %c0_12] : memref<1x128xf32, #tpu.memory_space<vmem>>, vector<1x128xf32>
    %16 = vector.broadcast %15 : vector<1x128xf32> to vector<8x128xf32>
    %17 = arith.addf %14, %16 : vector<8x128xf32>
    %c0_13 = arith.constant 0 : index
    %c0_14 = arith.constant 0 : index
    %18 = vector.load %arg6[%c0_13, %c0_14] : memref<8x128xf32, #tpu.memory_space<vmem>>, vector<8x128xf32>
    tpu.vector_store %arg6[%c0_13, %c0_14], %17 {strides = array<i32>} : memref<8x128xf32, #tpu.memory_space<vmem>>, vector<8x128xf32>,
    return
  }
  func.func @transform_0(%arg0: i32) -> (i32, i32) {
    %c0_i32 = arith.constant 0 : i32
    %c0_i32_0 = arith.constant 0 : i32
    return %arg0, %c0_i32 : i32, i32
  }
  func.func @transform_1(%arg0: i32) -> (i32, i32) {
    %c0_i32 = arith.constant 0 : i32
    %c0_i32_0 = arith.constant 0 : i32
    %c0_i32_1 = arith.constant 0 : i32
    return %c0_i32, %c0_i32_0 : i32, i32
  }
  func.func @transform_2(%arg0: i32) -> (i32, i32) {
    %c0_i32 = arith.constant 0 : i32
    %c0_i32_0 = arith.constant 0 : i32
    %c0_i32_1 = arith.constant 0 : i32
    return %c0_i32, %c0_i32_0 : i32, i32
  }
  func.func @transform_3(%arg0: i32) -> (i32, i32) {
    %c0_i32 = arith.constant 0 : i32
    %c0_i32_0 = arith.constant 0 : i32
    %c0_i32_1 = arith.constant 0 : i32
    return %c0_i32, %c0_i32_0 : i32, i32
  }
  func.func @transform_4(%arg0: i32) -> (i32, i32) {
    %c0_i32 = arith.constant 0 : i32
    %c0_i32_0 = arith.constant 0 : i32
    %c0_i32_1 = arith.constant 0 : i32
    return %c0_i32, %c0_i32_0 : i32, i32
  }
  func.func @transform_5(%arg0: i32) -> (i32, i32) {
    %c0_i32 = arith.constant 0 : i32
    %c0_i32_0 = arith.constant 0 : i32
    return %arg0, %c0_i32 : i32, i32
  }
}

</mosaic_0001>

<bundles_post_ra>
// kernel: mlp_forward.1
= control target key start
LH: loop header
LB: loop body
LE: loop exit
PB: predicated region body
PF: predicated region fallthrough
CT: control target
= control target key end

     0   :  { %s787_s0 = inlined_call_operand.vmem [shape: f32[8,784], index: 0, kind: input, shape index: {}]   ;;  %s788_s1 = inlined_call_operand.vmem [shape: f32[784,128], index: 1, kind: input, shape index: {}]   ;;  %s789_s2 = inlined_call_operand.vmem [shape: f32[1,128], index: 2, kind: input, shape index: {}]   ;;  %s790_s3 = inlined_call_operand.vmem [shape: f32[128,128], index: 3, kind: input, shape index: {}]   ;;  %s791_s4 = inlined_call_operand.vmem [shape: f32[1,128], index: 4, kind: input, shape index: {}]   ;;  %s792_s5 = inlined_call_operand.hbm [shape: f32[8,128], index: 5, kind: output, shape index: {}]  }
   0x1   :  { %v43_v0 = vld [vmem:[%s788_s1 + $0x78] sm:$0xff]  ;;  %v42_v1 = vld [vmem:[%s788_s1 + $0x70] sm:$0xff]  ;;  %v41_v4 = vld [vmem:[%s788_s1 + $0x68] sm:$0xff] }
   0x2   :  { %v59_v2 = vld [vmem:[%s788_s1 + $0xf8] sm:$0xff]  ;;  %134 = vmatpush.msra.mxu0 %v43_v0  ;;  %v58_v3 = vld [vmem:[%s788_s1 + $0xf0] sm:$0xff]  ;;  %v57_v5 = vld [vmem:[%s788_s1 + $0xe8] sm:$0xff] }
   0x3   :  { %154 = vmatpush.msra.mxu1 %v59_v2  ;;  %v40_v6 = vld [vmem:[%s788_s1 + $0x60] sm:$0xff]  ;;  %v39_v8 = vld [vmem:[%s788_s1 + $0x58] sm:$0xff]  ;;  %v38_v10 = vld [vmem:[%s788_s1 + $0x50] sm:$0xff] }
   0x4   :  { %135 = vmatpush.msra.mxu0 %v42_v1  ;;  %v56_v7 = vld [vmem:[%s788_s1 + $0xe0] sm:$0xff]  ;;  %v55_v9 = vld [vmem:[%s788_s1 + $0xd8] sm:$0xff]  ;;  %v54_v12 = vld [vmem:[%s788_s1 + $0xd0] sm:$0xff] }
   0x5   :  { %155 = vmatpush.msra.mxu1 %v58_v3  ;;  %v75_v11 = vld [vmem:[%s788_s1 + $0x178] sm:$0xff]  ;;  %v74_v13 = vld [vmem:[%s788_s1 + $0x170] sm:$0xff]  ;;  %v73_v15 = vld [vmem:[%s788_s1 + $0x168] sm:$0xff] }
   0x6   :  { %136 = vmatpush.msra.mxu0 %v41_v4  ;;  %174 = vmatpush.msra.mxu2 %v75_v11  ;;  %v91_v14 = vld [vmem:[%s788_s1 + $0x1f8] sm:$0xff]  ;;  %v90_v16 = vld [vmem:[%s788_s1 + $0x1f0] sm:$0xff]  ;;  %v37_v17 = vld [vmem:[%s788_s1 + $0x48] sm:$0xff] }
   0x7   :  { %156 = vmatpush.msra.mxu1 %v57_v5  ;;  %v53_v18 = vld [vmem:[%s788_s1 + $0xc8] sm:$0xff]  ;;  %194 = vmatpush.msra.mxu3 %v91_v14  ;;  %v72_v19 = vld [vmem:[%s788_s1 + $0x160] sm:$0xff]  ;;  %v71_v23 = vld [vmem:[%s788_s1 + $0x158] sm:$0xff] }
   0x8   :  { %137 = vmatpush.msra.mxu0 %v40_v6  ;;  %175 = vmatpush.msra.mxu2 %v74_v13  ;;  %v89_v20 = vld [vmem:[%s788_s1 + $0x1e8] sm:$0xff]  ;;  %v36_v21 = vld [vmem:[%s788_s1 + $0x40] sm:$0xff]  ;;  %v35_v25 = vld [vmem:[%s788_s1 + $0x38] sm:$0xff] }
   0x9   :  { %157 = vmatpush.msra.mxu1 %v56_v7  ;;  %v52_v22 = vld [vmem:[%s788_s1 + $0xc0] sm:$0xff]  ;;  %195 = vmatpush.msra.mxu3 %v90_v16  ;;  %v51_v26 = vld [vmem:[%s788_s1 + $0xb8] sm:$0xff]  ;;  %v70_v27 = vld [vmem:[%s788_s1 + $0x150] sm:$0xff] }
   0xa   :  { %138 = vmatpush.msra.mxu0 %v39_v8  ;;  %176 = vmatpush.msra.mxu2 %v73_v15  ;;  %v88_v24 = vld [vmem:[%s788_s1 + $0x1e0] sm:$0xff]  ;;  %v87_v28 = vld [vmem:[%s788_s1 + $0x1d8] sm:$0xff]  ;;  %v34_v29 = vld [vmem:[%s788_s1 + $0x30] sm:$0xff] }
   0xb   :  { %158 = vmatpush.msra.mxu1 %v55_v9  ;;  %196 = vmatpush.msra.mxu3 %v89_v20  ;;  %v50_v30 = vld [vmem:[%s788_s1 + $0xb0] sm:$0xff]  ;;  %v69_v31 = vld [vmem:[%s788_s1 + $0x148] sm:$0xff]  ;;  %v68_v35 = vld [vmem:[%s788_s1 + $0x140] sm:$0xff] }
   0xc   :  { %139 = vmatpush.msra.mxu0 %v38_v10  ;;  %177 = vmatpush.msra.mxu2 %v72_v19  ;;  %v86_v32 = vld [vmem:[%s788_s1 + $0x1d0] sm:$0xff]  ;;  %v33_v33 = vld [vmem:[%s788_s1 + $0x28] sm:$0xff]  ;;  %v32_v37 = vld [vmem:[%s788_s1 + $0x20] sm:$0xff] }
   0xd   :  { %159 = vmatpush.msra.mxu1 %v54_v12  ;;  %197 = vmatpush.msra.mxu3 %v88_v24  ;;  %v49_v34 = vld [vmem:[%s788_s1 + $0xa8] sm:$0xff]  ;;  %v48_v38 = vld [vmem:[%s788_s1 + $0xa0] sm:$0xff]  ;;  %v67_v39 = vld [vmem:[%s788_s1 + $0x138] sm:$0xff] }
   0xe   :  { %140 = vmatpush.msra.mxu0 %v37_v17  ;;  %178 = vmatpush.msra.mxu2 %v71_v23  ;;  %v85_v36 = vld [vmem:[%s788_s1 + $0x1c8] sm:$0xff]  ;;  %v84_v40 = vld [vmem:[%s788_s1 + $0x1c0] sm:$0xff]  ;;  %v31_v41 = vld [vmem:[%s788_s1 + $0x18] sm:$0xff] }
   0xf   :  { %160 = vmatpush.msra.mxu1 %v53_v18  ;;  %198 = vmatpush.msra.mxu3 %v87_v28  ;;  %v47_v42 = vld [vmem:[%s788_s1 + $0x98] sm:$0xff]  ;;  %v66_v43 = vld [vmem:[%s788_s1 + $0x130] sm:$0xff]  ;;  %v65_v47 = vld [vmem:[%s788_s1 + $0x128] sm:$0xff] }
  0x10   :  { %141 = vmatpush.msra.mxu0 %v36_v21  ;;  %179 = vmatpush.msra.mxu2 %v70_v27  ;;  %v83_v44 = vld [vmem:[%s788_s1 + $0x1b8] sm:$0xff]  ;;  %v30_v45 = vld [vmem:[%s788_s1 + $0x10] sm:$0xff]  ;;  %v29_v49 = vld [vmem:[%s788_s1 + $0x8] sm:$0xff] }
  0x11   :  { %161 = vmatpush.msra.mxu1 %v52_v22  ;;  %199 = vmatpush.msra.mxu3 %v86_v32  ;;  %v46_v46 = vld [vmem:[%s788_s1 + $0x90] sm:$0xff]  ;;  %v45_v50 = vld [vmem:[%s788_s1 + $0x88] sm:$0xff]  ;;  %v64_v51 = vld [vmem:[%s788_s1 + $0x120] sm:$0xff] }
  0x12   :  { %142 = vmatpush.msra.mxu0 %v35_v25  ;;  %180 = vmatpush.msra.mxu2 %v69_v31  ;;  %v82_v48 = vld [vmem:[%s788_s1 + $0x1b0] sm:$0xff]  ;;  %v81_v52 = vld [vmem:[%s788_s1 + $0x1a8] sm:$0xff]  ;;  %v28_v53 = vld [vmem:[%s788_s1] sm:$0xff] }
  0x13   :  { %162 = vmatpush.msra.mxu1 %v51_v26  ;;  %200 = vmatpush.msra.mxu3 %v85_v36  ;;  %v44_v54 = vld [vmem:[%s788_s1 + $0x80] sm:$0xff]  ;;  %v107_v55 = vld [vmem:[%s788_s1 + $0x278] sm:$0xff]  ;;  %v106_v59 = vld [vmem:[%s788_s1 + $0x270] sm:$0xff] }
  0x14   :  { %143 = vmatpush.msra.mxu0 %v34_v29  ;;  %181 = vmatpush.msra.mxu2 %v68_v35  ;;  %v123_v56 = vld [vmem:[%s788_s1 + $0x2f8] sm:$0xff]  ;;  %v80_v58 = vld [vmem:[%s788_s1 + $0x1a0] sm:$0xff]  ;;  %v122_v60 = vld [vmem:[%s788_s1 + $0x2f0] sm:$0xff] }
  0x15   :  { %163 = vmatpush.msra.mxu1 %v50_v30  ;;  %201 = vmatpush.msra.mxu3 %v84_v40  ;;  %v63_v57 = vld [vmem:[%s788_s1 + $0x118] sm:$0xff]  ;;  %v62_v61 = vld [vmem:[%s788_s1 + $0x110] sm:$0xff]  ;;  %v105_v63 = vld [vmem:[%s788_s1 + $0x268] sm:$0xff] }
  0x16   :  { %144 = vmatpush.msra.mxu0 %v33_v33  ;;  %182 = vmatpush.msra.mxu2 %v67_v39  ;;  %v79_v62 = vld [vmem:[%s788_s1 + $0x198] sm:$0xff]  ;;  %v121_v0 = vld [vmem:[%s788_s1 + $0x2e8] sm:$0xff]  ;;  %v104_v1 = vld [vmem:[%s788_s1 + $0x260] sm:$0xff] }
  0x17   :  { %164 = vmatpush.msra.mxu1 %v49_v34  ;;  %202 = vmatpush.msra.mxu3 %v83_v44  ;;  %v61_v2 = vld [vmem:[%s788_s1 + $0x108] sm:$0xff]  ;;  %v78_v3 = vld [vmem:[%s788_s1 + $0x190] sm:$0xff]  ;;  %v120_v4 = vld [vmem:[%s788_s1 + $0x2e0] sm:$0xff] }
  0x18   :  { %145 = vmatpush.msra.mxu0 %v32_v37  ;;  %183 = vmatpush.msra.mxu2 %v66_v43  ;;  %v60_v5 = vld [vmem:[%s788_s1 + $0x100] sm:$0xff]  ;;  %v77_v6 = vld [vmem:[%s788_s1 + $0x188] sm:$0xff] }
  0x19   :  { %165 = vmatpush.msra.mxu1 %v48_v38  ;;  %203 = vmatpush.msra.mxu3 %v82_v48 }
  0x1a   :  { %146 = vmatpush.msra.mxu0 %v31_v41  ;;  %184 = vmatpush.msra.mxu2 %v65_v47 }
  0x1b   :  { %166 = vmatpush.msra.mxu1 %v47_v42  ;;  %204 = vmatpush.msra.mxu3 %v81_v52 }
  0x1c   :  { %147 = vmatpush.msra.mxu0 %v30_v45  ;;  %185 = vmatpush.msra.mxu2 %v64_v51 }
  0x1d   :  { %167 = vmatpush.msra.mxu1 %v46_v46  ;;  %205 = vmatpush.msra.mxu3 %v80_v58 }
  0x1e   :  { %148 = vmatpush.msra.mxu0 %v29_v49  ;;  %186 = vmatpush.msra.mxu2 %v63_v57 }
  0x1f   :  { %168 = vmatpush.msra.mxu1 %v45_v50  ;;  %206 = vmatpush.msra.mxu3 %v79_v62 }
  0x20   :  { %149 = vmatpush.msra.mxu0 %v28_v53  ;;  %187 = vmatpush.msra.mxu2 %v62_v61 }
  0x21   :  { %169 = vmatpush.msra.mxu1 %v44_v54 }
  0x22   :  { %214 = vmatpush.msrb.mxu0 %v107_v55 }
  0x23   :  { %234 = vmatpush.msrb.mxu1 %v123_v56 }
  0x24   :  { %215 = vmatpush.msrb.mxu0 %v106_v59 }
  0x25   :  { %235 = vmatpush.msrb.mxu1 %v122_v60 }
  0x26   :  { %216 = vmatpush.msrb.mxu0 %v105_v63 }
  0x27   :  { %236 = vmatpush.msrb.mxu1 %v121_v0 }
  0x28   :  { %10 = vsyncpa [#allocation3], 0  ;;  %v103_v7 = vld [vmem:[%s788_s1 + $0x258] sm:$0xff]  ;;  %188 = vmatpush.msra.mxu2 %v61_v2  ;;  %207 = vmatpush.msra.mxu3 %v78_v3  ;;  %v23_v9 = vld [vmem:[%s787_s0 + $0x10] sm:$0xff]  ;;  %vm130_vm0 = vcmask 130048   ;;  %s384_s8 = smov [#allocation2]  }
  0x29   :  { %v119_v8 = vld [vmem:[%s788_s1 + $0x2d8] sm:$0xff]  ;;  %217 = vmatpush.msrb.mxu0 %v104_v1  ;;  %237 = vmatpush.msrb.mxu1 %v120_v4  ;;  %v76_v10 = vld [vmem:[%s788_s1 + $0x180] sm:$0xff]  ;;  %v102_v11 = vld [vmem:[%s788_s1 + $0x250] sm:$0xff]  ;;  %s339_s9 = sshll.u32 %s384_s8, 4  ;;  %s341_s12 = sshll.u32 %s792_s5, 4  ;;  %s340_s9 = int_to_ptr.vmem [resolvable:$true] %s339_s9  ;;  %s342_s12 = int_to_ptr.hbm [resolvable:$true] %s341_s12 }
  0x2a   :  { %v118_v12 = vld [vmem:[%s788_s1 + $0x2d0] sm:$0xff]  ;;  %189 = vmatpush.msra.mxu2 %v60_v5  ;;  %208 = vmatpush.msra.mxu3 %v77_v6  ;;  %v125_v13 = vld [vmem:[%s788_s1 + $0x308] sm:$0xff]  ;;  %v21_v14 = vld [vmem:[%s787_s0] sm:$0xff] }
  0x2b   :  { %218 = vmatpush.msrb.mxu0 %v103_v7  ;;  %238 = vmatpush.msrb.mxu1 %v119_v8  ;;  %v101_v15 = vld [vmem:[%s788_s1 + $0x248] sm:$0xff]  ;;  %v24_v17 = vld [vmem:[%s787_s0 + $0x18] sm:$0xff]  ;;  %v100_v19 = vld [vmem:[%s788_s1 + $0x240] sm:$0xff] }
  0x2c   :  { %v117_v16 = vld [vmem:[%s788_s1 + $0x2c8] sm:$0xff]  ;;  %190 = vmatmul.f32.vlgmr.msra.gmra.mxu2 %v23_v9  ;;  %209 = vmatpush.msra.mxu3 %v76_v10  ;;  %v116_v20 = vld [vmem:[%s788_s1 + $0x2c0] sm:$0xff]  ;;  %v99_v22 = vld [vmem:[%s788_s1 + $0x238] sm:$0xff] }
  0x2d   :  { %219 = vmatpush.msrb.mxu0 %v102_v11  ;;  %239 = vmatpush.msrb.mxu1 %v118_v12  ;;  %v22_v18 = vld [vmem:[%s787_s0 + $0x8] sm:$0xff]  ;;  %v124_v21 = vld [vmem:[%s788_s1 + $0x300] sm:$0xff]  ;;  %v115_v23 = vld [vmem:[%s788_s1 + $0x2b8] sm:$0xff] }
  0x2e   :  { %268 = vmatpush.msrb.mxu2 %v125_v13  ;;  %150 = vmatmul.f32.vlgmr.msra.gmra.mxu0 %v21_v14  ;;  %v27_v24 = vld [vmem:[%s787_s0 + $0x30] sm:$0xff]  ;;  %v97_v27 = vld [vmem:[%s788_s1 + $0x228] sm:$0xff]  ;;  %v96_v29 = vld [vmem:[%s788_s1 + $0x220] sm:$0xff] }
  0x2f   :  { %220 = vmatpush.msrb.mxu0 %v101_v15  ;;  %240 = vmatpush.msrb.mxu1 %v117_v16  ;;  %v98_v25 = vld [vmem:[%s788_s1 + $0x230] sm:$0xff]  ;;  %v113_v28 = vld [vmem:[%s788_s1 + $0x2a8] sm:$0xff]  ;;  %v112_v30 = vld [vmem:[%s788_s1 + $0x2a0] sm:$0xff] }
  0x30   :  { %210 = vmatmul.f32.vlgmr.msra.gmra.mxu3 %v24_v17  ;;  %170 = vmatmul.f32.vlgmr.msra.gmra.mxu1 %v22_v18  ;;  %v114_v26 = vld [vmem:[%s788_s1 + $0x2b0] sm:$0xff]  ;;  %v95_v31 = vld [vmem:[%s788_s1 + $0x218] sm:$0xff]  ;;  %v93_v35 = vld [vmem:[%s788_s1 + $0x208] sm:$0xff] }
  0x31   :  { %221 = vmatpush.msrb.mxu0 %v100_v19  ;;  %241 = vmatpush.msrb.mxu1 %v116_v20  ;;  %v111_v32 = vld [vmem:[%s788_s1 + $0x298] sm:$0xff]  ;;  %v94_v33 = vld [vmem:[%s788_s1 + $0x210] sm:$0xff]  ;;  %v109_v36 = vld [vmem:[%s788_s1 + $0x288] sm:$0xff] }
  0x32   :  { %269 = vmatpush.msrb.mxu2 %v124_v21  ;;  %v110_v34 = vld [vmem:[%s788_s1 + $0x290] sm:$0xff]  ;;  %v92_v37 = vld [vmem:[%s788_s1 + $0x200] sm:$0xff]  ;;  %v26_v40 = vld [vmem:[%s787_s0 + $0x28] sm:$0xff] }
  0x33   :  { %222 = vmatpush.msrb.mxu0 %v99_v22  ;;  %242 = vmatpush.msrb.mxu1 %v115_v23  ;;  %v108_v38 = vld [vmem:[%s788_s1 + $0x280] sm:$0xff]  ;;  %v308_v41 = vld [vmem:[%s790_s3 + $0x78] sm:$0xff]  ;;  %v307_v42 = vld [vmem:[%s790_s3 + $0x70] sm:$0xff] }
  0x34   :  { %350 = vmatmul.msk.f32.vlgmr.msrb.gmra.mxu2 %vm130_vm0, %v27_v24  ;;  %v25_v39 = vld [vmem:[%s787_s0 + $0x20] sm:$0xff]  ;;  %313 = vmatpush.msrb.mxu3 %v308_v41  ;;  %v306_v43 = vld [vmem:[%s790_s3 + $0x68] sm:$0xff]  ;;  %v304_v46 = vld [vmem:[%s790_s3 + $0x58] sm:$0xff] }
  0x35   :  { %223 = vmatpush.msrb.mxu0 %v98_v25  ;;  %243 = vmatpush.msrb.mxu1 %v114_v26  ;;  %v305_v44 = vld [vmem:[%s790_s3 + $0x60] sm:$0xff]  ;;  %v303_v48 = vld [vmem:[%s790_s3 + $0x50] sm:$0xff]  ;;  %v302_v50 = vld [vmem:[%s790_s3 + $0x48] sm:$0xff] }
  0x36   :  { %314 = vmatpush.msrb.mxu3 %v307_v42  ;;  %v352_v45 = vld [vmem:[%s789_s2] ss:$0 sm:$0xff]  ;;  %v300_v53 = vld [vmem:[%s790_s3 + $0x38] sm:$0xff]  ;;  %v299_v55 = vld [vmem:[%s790_s3 + $0x30] sm:$0xff] }
  0x37   :  { %224 = vmatpush.msrb.mxu0 %v97_v27  ;;  %244 = vmatpush.msrb.mxu1 %v113_v28  ;;  %v301_v52 = vld [vmem:[%s790_s3 + $0x40] sm:$0xff]  ;;  %v298_v57 = vld [vmem:[%s790_s3 + $0x28] sm:$0xff]  ;;  %v296_v61 = vld [vmem:[%s790_s3 + $0x18] sm:$0xff] }
  0x38   :  { %315 = vmatpush.msrb.mxu3 %v306_v43  ;;  %v297_v59 = vld [vmem:[%s790_s3 + $0x20] sm:$0xff]  ;;  %v295_v63 = vld [vmem:[%s790_s3 + $0x10] sm:$0xff]  ;;  %v294_v0 = vld [vmem:[%s790_s3 + $0x8] sm:$0xff] }
  0x39   :  { %225 = vmatpush.msrb.mxu0 %v96_v29  ;;  %245 = vmatpush.msrb.mxu1 %v112_v30  ;;  %v293_v4 = vld [vmem:[%s790_s3] sm:$0xff] }
  0x3a   :  { %316 = vmatpush.msrb.mxu3 %v305_v44  ;;  %v353_v22 = vld [vmem:[%s791_s4] ss:$0 sm:$0xff] }
  0x3b   :  { %226 = vmatpush.msrb.mxu0 %v95_v31  ;;  %246 = vmatpush.msrb.mxu1 %v111_v32 }
  0x3c   :  { %317 = vmatpush.msrb.mxu3 %v304_v46 }
  0x3d   :  { %227 = vmatpush.msrb.mxu0 %v94_v33  ;;  %247 = vmatpush.msrb.mxu1 %v110_v34 }
  0x3e   :  { %318 = vmatpush.msrb.mxu3 %v303_v48 }
  0x3f   :  { %228 = vmatpush.msrb.mxu0 %v93_v35  ;;  %248 = vmatpush.msrb.mxu1 %v109_v36 }
  0x40   :  { %319 = vmatpush.msrb.mxu3 %v302_v50 }
  0x41   :  { %229 = vmatpush.msrb.mxu0 %v92_v37  ;;  %249 = vmatpush.msrb.mxu1 %v108_v38 }
  0x42   :  { %230 = vmatmul.f32.vlgmr.msrb.gmra.mxu0 %v25_v39  ;;  %250 = vmatmul.f32.vlgmr.msrb.gmra.mxu1 %v26_v40 }
  0x43   :  { %320 = vmatpush.msrb.mxu3 %v301_v52 }
  0x45   :  { %321 = vmatpush.msrb.mxu3 %v300_v53 }
  0x47   :  { %322 = vmatpush.msrb.mxu3 %v299_v55 }
  0x49   :  { %323 = vmatpush.msrb.mxu3 %v298_v57 }
  0x4b   :  { %324 = vmatpush.msrb.mxu3 %v297_v59 }
  0x4d   :  { %325 = vmatpush.msrb.mxu3 %v296_v61 }
  0x4f   :  { %326 = vmatpush.msrb.mxu3 %v295_v63 }
  0x51   :  { %327 = vmatpush.msrb.mxu3 %v294_v0 }
  0x53   :  { %328 = vmatpush.msrb.mxu3 %v293_v4 }
  0xab   :  { %v151_v47 = vpop.f32.mrf.mxu0 }
  0xac   :  { %v152_v49 = vadd.f32 %v352_v45, %v151_v47 }
  0xad   :  { %v171_v51 = vpop.f32.mrf.mxu1 }
  0xae   :  { %v172_v54 = vadd.f32 %v171_v51, %v152_v49 }
  0xaf   :  { %v191_v56 = vpop.f32.mrf.mxu2 }
  0xb0   :  { %v192_v58 = vadd.f32 %v191_v56, %v172_v54 }
  0xb3   :  { %v211_v60 = vpop.f32.mrf.mxu3 }
  0xb4   :  { %v212_v62 = vadd.f32 %v211_v60, %v192_v58 }
  0xb7   :  { %v271_v5 = vpop.f32.mrf.mxu2 }
  0xbf   :  { %v231_v1 = vpop.f32.mrf.mxu0  ;;  %v251_v2 = vpop.f32.mrf.mxu1 }
  0xc0   :  { %v232_v3 = vadd.f32 %v231_v1, %v212_v62 }
  0xc2   :  { %v252_v6 = vadd.f32 %v251_v2, %v232_v3 }
  0xc4   :  { %v272_v7 = vadd.f32 %v271_v5, %v252_v6 }
  0xc6   :  { %v274_v8 = vsub.f32 0.0, %v272_v7 }
  0xc8   :  { %v275_v9 = vmul.f32 1.442695, %v274_v8 }
  0xca   :  { %354 = vpow2.f32 %v275_v9 }
  0xd0   :  { %v355_v10 = vpop.eup %354 }
  0xd1   :  { %v277_v11 = vadd.f32 1.0, %v355_v10 }
  0xd3   :  { %356 = vrcp.f32 %v277_v11  ;;  %v289_v15 = vand.u32 2147483648, %v277_v11  ;;  %v287_v17 = vand.u32 2147483647, %v277_v11  ;;  %vm283_vm2 = vweird.f32 %v277_v11 }
  0xd5   :  { %v290_v19 = vor.u32 1.1754944e-38, %v289_v15  ;;  %vm288_vm4 = vcmp.eq.f32.partialorder %v287_v17, 8.507059e+37 }
  0xd9   :  { %v357_v12 = vpop.eup %356 }
  0xda   :  { %v279_v13 = vmul.f32 %v357_v12, %v277_v11  ;;  %vm284_vm1 = vweird.f32 %v357_v12 }
  0xdb   :  { %vm285_vm3 = vmor %vm283_vm2, %vm284_vm1 }
  0xdc   :  { %v280_v14 = vsub.f32 1.0, %v279_v13 }
  0xde   :  { %v281_v16 = vmul.f32 %v357_v12, %v280_v14 }
  0xe0   :  { %v282_v18 = vadd.f32 %v357_v12, %v281_v16 }
  0xe2   :  { %v286_v20 = vsel %vm285_vm3, %v357_v12, %v282_v18 }
  0xe3   :  { %v291_v21 = vsel %vm288_vm4, %v290_v19, %v286_v20 }
  0xe4   :  { %329 = vmatmul.f32.vlgmr.msrb.gmra.mxu3 %v291_v21 }
 0x167   :  { %v330_v23 = vpop.f32.mrf.mxu3 }
 0x168   :  { %v331_v24 = vadd.f32 %v353_v22, %v330_v23 }
 0x16a   :  { %333 = vst [vmem:[#allocation2] sm:$0xff] %v331_v24 }
 0x16b   :  { %344 = dma.vmem_to_hbm [thread:$0]  %s340_s9, 128, %s342_s12, [#allocation3]  }
 0x16c   :  { %382 = dma.done.wait [#allocation3], 128  }
 0x16d   :  { %383 = vsyncadd [#allocation3], 4294967168 }
 0x16e   :  { %349 = vsyncpa [#allocation3], 1 }

</bundles_post_ra>
